<compile_context>
chip_gen: v7x
topology: tpu7x:2x2x1
jax: 0.10.0
libtpu: 0.0.40
codegen_flags: <defaults>
</compile_context>

<pallas_src>
import jax
import jax.numpy as jnp
from jax import lax
from jax.experimental import pallas as pl
from jax.experimental.pallas import tpu as pltpu


def _round_up(x, m):
    return ((x + m - 1) // m) * m


# ---------------------------------------------------------------------------
# Path A: HBM DMA row gather (table stays in HBM; for GloVe-sized vocabs).
# ---------------------------------------------------------------------------
def _hbm_gather_kernel(ids_ref, table_ref, out_ref, row0_ref, sem):
    # ids_ref  : (n_pad,) int32 in SMEM (scalar prefetch; masked + clamped)
    # table_ref: (V, D) in HBM (memory_space=pl.ANY, no auto-DMA)
    # out_ref  : (TN, D) VMEM output block
    # row0_ref : (1, D) VMEM scratch holding table row 0 (for masked tokens)
    # sem      : (2,) DMA semaphores -- [0]: row gathers (shared), [1]: row 0
    i = pl.program_id(0)
    tn = out_ref.shape[0]
    base = i * tn

    # Prefetch table row 0 into VMEM; it serves every masked (id == 0) row of
    # this tile without a per-row HBM DMA.  Re-fetched every step (tiny copy,
    # overlaps the issue loop) so it stays correct under megacore sharding.
    row0_cp = pltpu.make_async_copy(
        table_ref.at[pl.ds(0, 1), :], row0_ref, sem.at[1])
    row0_cp.start()

    # Phase 1: issue one row-gather DMA per *non-zero* id, all in flight on a
    # single shared semaphore.  All SMEM id reads happen before any .wait().
    def _issue(j, n_started):
        row = ids_ref[base + j]

        @pl.when(row != 0)
        def _():
            pltpu.make_async_copy(
                table_ref.at[pl.ds(row, 1), :],
                out_ref.at[pl.ds(j, 1), :],
                sem.at[0],
            ).start()

        return n_started + (row != 0).astype(jnp.int32)

    n_started = lax.fori_loop(0, tn, _issue, jnp.int32(0), unroll=8)

    # Phase 2: masked rows get table row 0 replicated from VMEM with plain
    # vector stores while the gather DMAs are still in flight.
    row0_cp.wait()

    def _fill_zero(j, carry):
        row = ids_ref[base + j]

        @pl.when(row == 0)
        def _():
            out_ref[pl.ds(j, 1), :] = row0_ref[...]

        return carry

    lax.fori_loop(0, tn, _fill_zero, 0, unroll=8)

    # Phase 3: wait for every started gather.  All copies are the same (1, D)
    # size, so per-copy shape-matched waits on the shared semaphore are exact.
    def _wait(j, carry):
        pltpu.make_async_copy(
            table_ref.at[pl.ds(0, 1), :],
            out_ref.at[pl.ds(0, 1), :],
            sem.at[0],
        ).wait()
        return carry

    lax.fori_loop(0, n_started, _wait, 0)


# ---------------------------------------------------------------------------
# Path B: VMEM-resident table (small/medium vocab); in-VMEM dynamic row loads.
# ---------------------------------------------------------------------------
def _vmem_gather_kernel(ids_ref, table_ref, out_ref):
    # ids_ref  : (n_pad,) int32 in SMEM
    # table_ref: (V, D) in VMEM (constant block index -> DMA'd once, reused)
    # out_ref  : (TN, D) VMEM output block
    i = pl.program_id(0)
    tn = out_ref.shape[0]
    base = i * tn

    def _copy(j, carry):
        row = ids_ref[base + j]
        out_ref[pl.ds(j, 1), :] = table_ref[pl.ds(row, 1), :]
        return carry

    lax.fori_loop(0, tn, _copy, 0, unroll=8)


# ---------------------------------------------------------------------------
# Wrapper
# ---------------------------------------------------------------------------
def _gather_rows(ids_1d, table, *, rows_per_tile, force_hbm_gather):
    (n,) = ids_1d.shape
    v, d = table.shape
    itemsize = jnp.dtype(table.dtype).itemsize

    # Row-tile size: multiple of 8, large (amortizes per-step overhead), but
    # keep >= 2 grid steps when possible so v7x megacore can shard row tiles.
    n8 = _round_up(n, 8)
    tn = min(rows_per_tile, n8)
    if n8 // tn < 2 and n8 >= 16:
        tn = max(8, _round_up(n8 // 2, 8))
    n_pad = _round_up(n, tn)
    if n_pad != n:
        ids_1d = jnp.pad(ids_1d, (0, n_pad - n))  # pad ids = 0 (row 0); sliced off

    out_block_bytes = tn * d * itemsize
    table_bytes = v * d * itemsize
    try:
        vmem_cap = int(pltpu.get_tpu_info().vmem_capacity_bytes)
    except Exception:
        vmem_cap = 64 << 20  # conservative per-TensorCore VMEM (v7x)

    # VMEM-resident-table fast path: table + double-buffered output blocks
    # (the Pallas pipeline double-buffers both) must comfortably fit.
    vmem_need = 2 * table_bytes + 2 * out_block_bytes + (4 << 20)
    use_vmem_table = (not force_hbm_gather) and vmem_need <= (3 * vmem_cap) // 4

    if use_vmem_table:
        grid_spec = pltpu.PrefetchScalarGridSpec(
            num_scalar_prefetch=1,                      # masked ids -> SMEM
            grid=(n_pad // tn,),
            # Constant block index: table crosses HBM once, reused every step.
            in_specs=[pl.BlockSpec((v, d), lambda i, ids: (0, 0))],
            out_specs=pl.BlockSpec((tn, d), lambda i, ids: (i, 0)),
        )
        kernel = _vmem_gather_kernel
        vmem_limit = int(min(vmem_cap, max(vmem_need, 32 << 20)))
    else:
        grid_spec = pltpu.PrefetchScalarGridSpec(
            num_scalar_prefetch=1,                      # masked ids -> SMEM
            grid=(n_pad // tn,),
            in_specs=[pl.BlockSpec(memory_space=pl.ANY)],   # table stays in HBM
            out_specs=pl.BlockSpec((tn, d), lambda i, ids: (i, 0)),
            scratch_shapes=[
                pltpu.VMEM((1, d), table.dtype),        # table row 0 cache
                pltpu.SemaphoreType.DMA((2,)),          # [0] gathers, [1] row 0
            ],
        )
        kernel = _hbm_gather_kernel
        vmem_limit = int(min(vmem_cap,
                             max(2 * out_block_bytes + (8 << 20), 32 << 20)))

    out = pl.pallas_call(
        kernel,
        out_shape=jax.ShapeDtypeStruct((n_pad, d), table.dtype),
        grid_spec=grid_spec,
        compiler_params=pltpu.CompilerParams(
            dimension_semantics=("parallel",),          # shard row tiles (v7x)
            vmem_limit_bytes=vmem_limit,
        ),
    )(ids_1d, table)

    return out[:n] if n_pad != n else out


def masked_embedding(lyrics_ids, mask, table, *, rows_per_tile=1024,
                     force_hbm_gather=False, max_rows_per_call=64 * 1024):
    """lyrics_ids, mask: (B, S) int; table: (V, D) -> (B, S, D) in table.dtype.

    Matches the PyTorch module: `masked = lyrics_ids * mask` then an embedding
    row gather, so mask==0 tokens receive table row 0 (NOT zeros).  Out-of-range
    ids are clamped to [0, V-1] (PyTorch would raise).
    """
    b, s = lyrics_ids.shape
    v, d = table.shape
    n = b * s

    # Mask multiply in the wrapper (one trivial XLA op); the masked ids become
    # the SMEM scalar-prefetch argument of the gather kernel.
    masked = (lyrics_ids.astype(jnp.int32) * mask.astype(jnp.int32)).reshape(n)
    masked = jnp.clip(masked, 0, v - 1)

    # Guard the SMEM scalar-prefetch footprint (1-D s32[N] pads to
    # next_pow2(4N) bytes): chunk very long batch*seq into separate calls.
    outs = []
    for start in range(0, n, max_rows_per_call):
        outs.append(
            _gather_rows(masked[start:start + max_rows_per_call], table,
                         rows_per_tile=rows_per_tile,
                         force_hbm_gather=force_hbm_gather))
    out = outs[0] if len(outs) == 1 else jnp.concatenate(outs, axis=0)

    return out.reshape(b, s, d)


if __name__ == "__main__":
    key = jax.random.PRNGKey(0)
    k_tab, k_ids, k_mask = jax.random.split(key, 3)

    # Small synthetic shapes: batch=2, seq=8, vocab=32, embed_dim=32
    B, S, V, D = 2, 8, 32, 32

    # Deterministic synthetic "glove.npy" embedding table (built in-script).
    glove = jax.random.normal(k_tab, (V, D), dtype=jnp.float32)

    lyrics_ids = jax.random.randint(k_ids, (B, S), 0, V, dtype=jnp.int32)
    mask = jax.random.randint(k_mask, (B, S), 0, 2, dtype=jnp.int32)

    # Reference in plain JAX (same semantics as the PyTorch gather).
    ref = glove[lyrics_ids * mask]

    # Default dispatch: tiny table -> VMEM-resident fast path.
    embs = jax.block_until_ready(masked_embedding(lyrics_ids, mask, glove))
    assert embs.shape == (B, S, D)
    assert jnp.allclose(embs, ref, atol=1e-5), "VMEM-path mismatch vs reference"

    # Also exercise the HBM DMA-gather path (used for GloVe-sized vocabs).
    embs_hbm = jax.block_until_ready(
        masked_embedding(lyrics_ids, mask, glove, force_hbm_gather=True))
    assert jnp.allclose(embs_hbm, ref, atol=1e-5), "HBM-path mismatch vs reference"

    print("KERNEL_OK")
</pallas_src>

<mosaic_0001>
module attributes {stable_mosaic.version = 11 : i64} {
  func.func @_vmem_gather_kernel(%arg0: i32, %arg1: memref<16xi32, #tpu.memory_space<smem>>, %arg2: memref<32x32xf32, #tpu.memory_space<vmem>>, %arg3: memref<8x32xf32, #tpu.memory_space<vmem>>) attributes {dimension_semantics = [#tpu.dimension_semantics<parallel>], iteration_bounds = array<i64: 2>, scalar_prefetch = 1 : i64, scratch_operands = 0 : i64, tpu.core_type = #tpu.core_type<tc>, window_params = [{pipeline_mode = #tpu.pipeline_mode<synchronous>, transform_indices = @transform_0, window_bounds = array<i64: 32, 32>}, {transform_indices = @transform_1, window_bounds = array<i64: 8, 32>}]} {
    %c8_i32 = arith.constant 8 : i32
    %0 = arith.muli %arg0, %c8_i32 : i32
    %c0_i32 = arith.constant 0 : i32
    %1 = arith.addi %0, %c0_i32 : i32
    %2 = arith.index_cast %1 : i32 to index
    %3 = memref.load %arg1[%2] : memref<16xi32, #tpu.memory_space<smem>>
    %4 = arith.index_cast %3 : i32 to index
    %c0 = arith.constant 0 : index
    %5 = vector.load %arg2[%4, %c0] : memref<32x32xf32, #tpu.memory_space<vmem>>, vector<1x32xf32>
    %6 = arith.index_cast %c0_i32 : i32 to index
    %c0_0 = arith.constant 0 : index
    %7 = vector.load %arg3[%6, %c0_0] : memref<8x32xf32, #tpu.memory_space<vmem>>, vector<1x32xf32>
    tpu.vector_store %arg3[%6, %c0_0], %5 {strides = array<i32>} : memref<8x32xf32, #tpu.memory_space<vmem>>, vector<1x32xf32>,
    %c1_i32 = arith.constant 1 : i32
    %8 = arith.addi %0, %c1_i32 : i32
    %9 = arith.index_cast %8 : i32 to index
    %10 = memref.load %arg1[%9] : memref<16xi32, #tpu.memory_space<smem>>
    %11 = arith.index_cast %10 : i32 to index
    %c0_1 = arith.constant 0 : index
    %12 = vector.load %arg2[%11, %c0_1] : memref<32x32xf32, #tpu.memory_space<vmem>>, vector<1x32xf32>
    %13 = arith.index_cast %c1_i32 : i32 to index
    %c0_2 = arith.constant 0 : index
    %14 = vector.load %arg3[%13, %c0_2] : memref<8x32xf32, #tpu.memory_space<vmem>>, vector<1x32xf32>
    tpu.vector_store %arg3[%13, %c0_2], %12 {strides = array<i32>} : memref<8x32xf32, #tpu.memory_space<vmem>>, vector<1x32xf32>,
    %c2_i32 = arith.constant 2 : i32
    %15 = arith.addi %0, %c2_i32 : i32
    %16 = arith.index_cast %15 : i32 to index
    %17 = memref.load %arg1[%16] : memref<16xi32, #tpu.memory_space<smem>>
    %18 = arith.index_cast %17 : i32 to index
    %c0_3 = arith.constant 0 : index
    %19 = vector.load %arg2[%18, %c0_3] : memref<32x32xf32, #tpu.memory_space<vmem>>, vector<1x32xf32>
    %20 = arith.index_cast %c2_i32 : i32 to index
    %c0_4 = arith.constant 0 : index
    %21 = vector.load %arg3[%20, %c0_4] : memref<8x32xf32, #tpu.memory_space<vmem>>, vector<1x32xf32>
    tpu.vector_store %arg3[%20, %c0_4], %19 {strides = array<i32>} : memref<8x32xf32, #tpu.memory_space<vmem>>, vector<1x32xf32>,
    %c3_i32 = arith.constant 3 : i32
    %22 = arith.addi %0, %c3_i32 : i32
    %23 = arith.index_cast %22 : i32 to index
    %24 = memref.load %arg1[%23] : memref<16xi32, #tpu.memory_space<smem>>
    %25 = arith.index_cast %24 : i32 to index
    %c0_5 = arith.constant 0 : index
    %26 = vector.load %arg2[%25, %c0_5] : memref<32x32xf32, #tpu.memory_space<vmem>>, vector<1x32xf32>
    %27 = arith.index_cast %c3_i32 : i32 to index
    %c0_6 = arith.constant 0 : index
    %28 = vector.load %arg3[%27, %c0_6] : memref<8x32xf32, #tpu.memory_space<vmem>>, vector<1x32xf32>
    tpu.vector_store %arg3[%27, %c0_6], %26 {strides = array<i32>} : memref<8x32xf32, #tpu.memory_space<vmem>>, vector<1x32xf32>,
    %c4_i32 = arith.constant 4 : i32
    %29 = arith.addi %0, %c4_i32 : i32
    %30 = arith.index_cast %29 : i32 to index
    %31 = memref.load %arg1[%30] : memref<16xi32, #tpu.memory_space<smem>>
    %32 = arith.index_cast %31 : i32 to index
    %c0_7 = arith.constant 0 : index
    %33 = vector.load %arg2[%32, %c0_7] : memref<32x32xf32, #tpu.memory_space<vmem>>, vector<1x32xf32>
    %34 = arith.index_cast %c4_i32 : i32 to index
    %c0_8 = arith.constant 0 : index
    %35 = vector.load %arg3[%34, %c0_8] : memref<8x32xf32, #tpu.memory_space<vmem>>, vector<1x32xf32>
    tpu.vector_store %arg3[%34, %c0_8], %33 {strides = array<i32>} : memref<8x32xf32, #tpu.memory_space<vmem>>, vector<1x32xf32>,
    %c5_i32 = arith.constant 5 : i32
    %36 = arith.addi %0, %c5_i32 : i32
    %37 = arith.index_cast %36 : i32 to index
    %38 = memref.load %arg1[%37] : memref<16xi32, #tpu.memory_space<smem>>
    %39 = arith.index_cast %38 : i32 to index
    %c0_9 = arith.constant 0 : index
    %40 = vector.load %arg2[%39, %c0_9] : memref<32x32xf32, #tpu.memory_space<vmem>>, vector<1x32xf32>
    %41 = arith.index_cast %c5_i32 : i32 to index
    %c0_10 = arith.constant 0 : index
    %42 = vector.load %arg3[%41, %c0_10] : memref<8x32xf32, #tpu.memory_space<vmem>>, vector<1x32xf32>
    tpu.vector_store %arg3[%41, %c0_10], %40 {strides = array<i32>} : memref<8x32xf32, #tpu.memory_space<vmem>>, vector<1x32xf32>,
    %c6_i32 = arith.constant 6 : i32
    %43 = arith.addi %0, %c6_i32 : i32
    %44 = arith.index_cast %43 : i32 to index
    %45 = memref.load %arg1[%44] : memref<16xi32, #tpu.memory_space<smem>>
    %46 = arith.index_cast %45 : i32 to index
    %c0_11 = arith.constant 0 : index
    %47 = vector.load %arg2[%46, %c0_11] : memref<32x32xf32, #tpu.memory_space<vmem>>, vector<1x32xf32>
    %48 = arith.index_cast %c6_i32 : i32 to index
    %c0_12 = arith.constant 0 : index
    %49 = vector.load %arg3[%48, %c0_12] : memref<8x32xf32, #tpu.memory_space<vmem>>, vector<1x32xf32>
    tpu.vector_store %arg3[%48, %c0_12], %47 {strides = array<i32>} : memref<8x32xf32, #tpu.memory_space<vmem>>, vector<1x32xf32>,
    %c7_i32 = arith.constant 7 : i32
    %50 = arith.addi %0, %c7_i32 : i32
    %51 = arith.index_cast %50 : i32 to index
    %52 = memref.load %arg1[%51] : memref<16xi32, #tpu.memory_space<smem>>
    %53 = arith.index_cast %52 : i32 to index
    %c0_13 = arith.constant 0 : index
    %54 = vector.load %arg2[%53, %c0_13] : memref<32x32xf32, #tpu.memory_space<vmem>>, vector<1x32xf32>
    %55 = arith.index_cast %c7_i32 : i32 to index
    %c0_14 = arith.constant 0 : index
    %56 = vector.load %arg3[%55, %c0_14] : memref<8x32xf32, #tpu.memory_space<vmem>>, vector<1x32xf32>
    tpu.vector_store %arg3[%55, %c0_14], %54 {strides = array<i32>} : memref<8x32xf32, #tpu.memory_space<vmem>>, vector<1x32xf32>,
    %c8_i32_15 = arith.constant 8 : i32
    return
  }
  func.func @transform_0(%arg0: i32, %arg1: memref<16xi32, #tpu.memory_space<smem>>) -> (i32, i32) {
    %c0_i32 = arith.constant 0 : i32
    %c0_i32_0 = arith.constant 0 : i32
    %c0_i32_1 = arith.constant 0 : i32
    return %c0_i32, %c0_i32_0 : i32, i32
  }
  func.func @transform_1(%arg0: i32, %arg1: memref<16xi32, #tpu.memory_space<smem>>) -> (i32, i32) {
    %c0_i32 = arith.constant 0 : i32
    %c0_i32_0 = arith.constant 0 : i32
    return %arg0, %c0_i32 : i32, i32
  }
}

</mosaic_0001>

<bundles_post_ra>
// kernel: tpu_custom_call.1
= control target key start
LH: loop header
LB: loop body
LE: loop exit
PB: predicated region body
PF: predicated region fallthrough
CT: control target
= control target key end

     0   :  { %s584_s0 = inlined_call_operand.hbm [shape: s32[16], index: 0, kind: input, shape index: {}]   ;;  %s585_s1 = inlined_call_operand.hbm [shape: f32[32,32], index: 1, kind: input, shape index: {}]   ;;  %s586_s2 = inlined_call_operand.hbm [shape: f32[16,32], index: 2, kind: output, shape index: {}]  }
   0x1   :  { %s301_s11 = scalar_lea.hbm %s584_s0, 16 }
   0x2   :  { %p302_p0 = scmp.ne.s32.totalorder %s584_s0, %s301_s11  ;;  %p305_p1 = scmp.lt.u32.totalorder %s301_s11, %s584_s0 }
   0x4   :  { %p307_p2 = pnand %p305_p1, %p302_p0 }
   0x6   :  { %310 = shalt.err (!%p307_p2)  }
   0x7   :  { %s409_s16 = smov [#allocation3]  }
   0x8   :  { %8 = dma.hbm_to_smem %s584_s0, 16, %s409_s16, [#allocation2] }
   0x9   :  { %383 = dma.done.wait [#allocation2], 16 }
   0xa   :  { %384 = vsyncadd [#allocation2], 4294967280 }
   0xb   :  { %10 = sfence }
   0xc   :  { %11 = vsyncpa [#allocation5], 0 }
   0xd   :  { %12 = vsyncpa [#allocation6], 0 }
   0xe   :  { %14 = vsyncpa [#allocation6 + $0x1], 0  ;;  %s441_s19 = smov 0   ;;  %s443_s20 = smov 0  }
   0xf   :  { %s445_s21 = smov 0   ;;  %s447_s22 = smov 0  }
  0x10 LB: > { %s462_s0 = sadd.s32 4294967295, %s407_s22   ;;  %s237_s23 = sadd.s32 4294967294, %s407_s22   ;;  %s407_s22 = sphi %s447_s22, %s602_s22   ;;  %s403_s21 = sphi %s445_s21, %s601_s21   ;;  %s399_s20 = sphi %s443_s20, %s600_s20   ;;  %s395_s19 = sphi %s441_s19, %s599_s19  }
  0x11   : > { %s466_s24 = sadd.s32 1, %s407_s22   ;;  %s48_s25 = sadd.s32 1, %s403_s21 }
  0x12   : > { %s45_s26 = ssub.s32 %s407_s22, %s466_s24  ;;  %p58_p3 = scmp.ne.s32.totalorder %s403_s21, %s399_s20 }
  0x13   : > { %p46_p4 = scmp.eq.s32.totalorder %s45_s26, 0  ;;  %p59_p5 = scmp.eq.s32.totalorder %s462_s0, 1 }
  0x14   : > { %p64_p6 = scmp.ne.s32.totalorder %s399_s20, %s395_s19  ;;  %p65_p7 = scmp.eq.s32.totalorder %s237_s23, 1 }
  0x15   : > { %s477_s27 = scalar_select %p46_p4, %s403_s21, %s48_s25  }
  0x16   : > { %p479_p8 = por %p59_p5, %p58_p3  ;;  %p483_p9 = por %p65_p7, %p64_p6 }
  0x17   : > { %p238_p10 = scmp.ge.s32.totalorder %s407_s22, 1  ;;  %p72_p11 = scmp.lt.s32.totalorder %s407_s22, 3 }
  0x18   : > { %s590_s28 = scalar_select %p479_p8, 1, 0 }
  0x19   : > { %s591_s29 = scalar_select %p483_p9, 1, 0 }
  0x1a   : > { %p587_p12 = scmp.eq.s32.totalorder %s462_s0, 0  ;;  %p490_p13 = pnand %p238_p10, %p72_p11 }
  0x1b   : > { %s410_s3 = smov [#allocation4]   ;;  %s311_s8 = scalar_lea.hbm %s585_s1, 512 }
  0x1c   : > { %s592_s30 = scalar_select %p490_p13, 1, 0 }
  0x1d   : > { %s84_s4 = sshll.u32 %s410_s3, 4  ;;  %p254_p0 = pneg %p490_p13  ;;  %s85_s4 = int_to_ptr.vmem [resolvable:$true] %s84_s4 }
  0x1e   : > { %p312_p2 = scmp.ne.s32.totalorder %s585_s1, %s311_s8  ;;  %p318_p6 = scmp.lt.u32.totalorder %s311_s8, %s585_s1 }
  0x1f   : > { %p498_p1 = pnand %p587_p12, %p254_p0 }
  0x21   : > { %p313_p3 = pneg %p498_p1 }
  0x23   : > { %p314_p4 = pnand %p313_p3, %p312_p2 }
  0x25   : > { %p315_p5 = pneg %p314_p4 }
  0x27   : > { %p320_p7 = pnand %p318_p6, %p315_p5 }
  0x29   : > { %323 = shalt.err (!%p320_p7)
}
  0x2a   : > { %s324_s13 = scalar_lea.vmem %s85_s4, 512  ;;  %p332_p12 = scmp.lt.s32.totalorder %s85_s4, %s85_s4 }
  0x2b   : > { %p325_p10 = scmp.ne.s32.totalorder %s85_s4, %s324_s13  ;;  %p333_p9 = scmp.lt.s32.totalorder %s324_s13, %s324_s13 }
  0x2d   : > { %p327_p11 = pnand %p325_p10, %p313_p3  ;;  %p334_p8 = por %p333_p9, %p332_p12 }
  0x2f   : > { %p328_p0 = pneg %p327_p11 }
  0x31   : > { %p335_p13 = pnand %p334_p8, %p328_p0 }
  0x33   : > { %338 = shalt.err (!%p335_p13)
}
  0x34   : > { %s411_s14 = smov 128   ;;  %s412_s15 = smov 8  }
  0x35   : > { %257 = dma.hbm_to_vmem [thread:$0]  (!%p498_p1), %s585_s1, 512, %s85_s4, [#allocation5], %s411_s14, %s411_s14, %s412_s15  }
  0x36   : > { %p594_p2 = scmp.ne.s32.totalorder %s592_s30, 0 }
  0x37   : > { %p595_p4 = scmp.eq.s32.totalorder (!%p594_p2), %s462_s0, 0 }
  0x38   : > { %100 = sbr.rel (%p594_p2) target bundleno = 103 (0x67), region = 24 }
  0x3f   : > { %386 = dma.done.wait (%p595_p4), [#allocation5], 512   ;;  %p596_p3 = pmov %p595_p4 }
  0x40   : > { %s112_s18 = sand.u32 1, %s399_s20   ;;  %s243_s23 = sshll.u32 %s462_s0, 3  ;;  %vm119_vm0 = vcmask 253952  }
  0x41   : > { %388 = vsyncadd (%p596_p3), [#allocation5], 4294966784  ;;  %s242_s25 = sshll.u32 %s112_s18, 3  ;;  %s116_s26 = sld [smem:[#allocation3 + %s243_s23]] }
  0x42   : > { %s121_s3 = sadd.s32 1, %s243_s23  ;;  %s126_s5 = sadd.s32 2, %s243_s23 }
  0x43   : > { %s122_s4 = sld [smem:[#allocation3 + %s121_s3]]  ;;  %s131_s30 = sadd.s32 3, %s243_s23 }
  0x44   : > { %s127_s6 = sld [smem:[#allocation3 + %s126_s5]]  ;;  %s136_s7 = sadd.s32 4, %s243_s23 }
  0x45   : > { %s132_s8 = sld [smem:[#allocation3 + %s131_s30]]  ;;  %s141_s10 = sadd.s32 5, %s243_s23 }
  0x46   : > { %s137_s9 = sld [smem:[#allocation3 + %s136_s7]]  ;;  %s146_s13 = sadd.s32 6, %s243_s23 }
  0x47   : > { %s117_s11 = scalar_lea.vmem [#allocation4], %s116_s26  ;;  %s142_s12 = sld [smem:[#allocation3 + %s141_s10]] }
  0x48   : > { %v118_v0 = vld [vmem:[%s117_s11] sm:$0x1]  ;;  %s114_s14 = scalar_lea.vmem [#allocation7], %s242_s25  ;;  %s147_s15 = sld [smem:[#allocation3 + %s146_s13]] }
  0x49   : > { %120 = vst.msk [vmem:[%s114_s14] sm:$0x1] %vm119_vm0, %v118_v0  ;;  %s151_s16 = sadd.s32 7, %s243_s23  ;;  %s123_s17 = scalar_lea.vmem [#allocation4], %s122_s4 }
  0x4a   : > { %v124_v1 = vld [vmem:[%s123_s17] sm:$0x1]  ;;  %s128_s3 = scalar_lea.vmem [#allocation4], %s127_s6  ;;  %s152_s5 = sld [smem:[#allocation3 + %s151_s16]] }
  0x4b   : > { %v129_v2 = vld [vmem:[%s128_s3] sm:$0x1]  ;;  %125 = vst.msk [vmem:[%s114_s14 + $0x1] sm:$0x1] %vm119_vm0, %v124_v1  ;;  %s133_s30 = scalar_lea.vmem [#allocation4], %s132_s8  ;;  %s245_s7 = sshll.u32 %s462_s0, 7 }
  0x4c   : > { %130 = vst.msk [vmem:[%s114_s14 + $0x2] sm:$0x1] %vm119_vm0, %v129_v2  ;;  %v134_v3 = vld [vmem:[%s133_s30] sm:$0x1]  ;;  %s138_s26 = scalar_lea.vmem [#allocation4], %s137_s9  ;;  %s170_s23 = sshll.u32 %s114_s14, 4  ;;  %s541_s23 = int_to_ptr.vmem [resolvable:$true] %s170_s23 }
  0x4d   : > { %v139_v4 = vld [vmem:[%s138_s26] sm:$0x1]  ;;  %135 = vst.msk [vmem:[%s114_s14 + $0x3] sm:$0x1] %vm119_vm0, %v134_v3  ;;  %s143_s25 = scalar_lea.vmem [#allocation4], %s142_s12  ;;  %s538_s8 = scalar_lea.hbm %s586_s2, %s245_s7 }
  0x4e   : > { %140 = vst.msk [vmem:[%s114_s14 + $0x4] sm:$0x1] %vm119_vm0, %v139_v4  ;;  %v144_v5 = vld [vmem:[%s143_s25] sm:$0x1]  ;;  %s148_s4 = scalar_lea.vmem [#allocation4], %s147_s15  ;;  %s157_s9 = scalar_lea.sflag [#allocation6], %s112_s18 }
  0x4f   : > { %145 = vst.msk [vmem:[%s114_s14 + $0x5] sm:$0x1] %vm119_vm0, %v144_v5  ;;  %v149_v6 = vld [vmem:[%s148_s4] sm:$0x1]  ;;  %s339_s11 = scalar_lea.vmem %s541_s23, 128  ;;  %p597_p9 = scmp.ne.s32.totalorder %s590_s28, 0 }
  0x50   : > { %150 = vst.msk [vmem:[%s114_s14 + $0x6] sm:$0x1] %vm119_vm0, %v149_v6  ;;  %s153_s0 = scalar_lea.vmem [#allocation4], %s152_s5  ;;  %p340_p8 = scmp.ne.s32.totalorder %s541_s23, %s339_s11 }
  0x51   : > { %v154_v7 = vld [vmem:[%s153_s0] sm:$0x1]  ;;  %s413_s12 = smov [#allocation7]  }
  0x52   : > { %155 = vst.msk [vmem:[%s114_s14 + $0x7] sm:$0x1] %vm119_vm0, %v154_v7  ;;  %p341_p12 = pnand %p340_p8, %p597_p9  ;;  %s343_s13 = sshll.u32 %s413_s12, 4  ;;  %s344_s13 = int_to_ptr.vmem [resolvable:$false] %s343_s13 }
  0x53   : > { %s345_s15 = scalar_lea.vmem %s344_s13, 256  ;;  %p346_p1 = scmp.lt.s32.totalorder %s541_s23, %s344_s13 }
  0x54   : > { %p342_p13 = pneg %p341_p12  ;;  %p347_p5 = scmp.lt.s32.totalorder %s345_s15, %s339_s11 }
  0x56   : > { %p348_p6 = por %p347_p5, %p346_p1 }
  0x58   : > { %p349_p7 = pnand %p348_p6, %p342_p13 }
  0x5a   : > { %352 = shalt.err (!%p349_p7)
}
  0x5b   : > { %s353_s18 = scalar_lea.hbm %s538_s8, 128  ;;  %s357_s17 = scalar_lea.hbm %s586_s2, 256 }
  0x5c   : > { %p354_p10 = scmp.ne.s32.totalorder %s538_s8, %s353_s18  ;;  %p358_p2 = scmp.lt.u32.totalorder %s538_s8, %s586_s2 }
  0x5d   : > { %p359_p4 = scmp.lt.u32.totalorder %s357_s17, %s353_s18  ;;  %p361_p8 = scmp.lt.u32.totalorder %s353_s18, %s538_s8 }
  0x5e   : > { %p355_p11 = pnand %p354_p10, %p597_p9 }
  0x5f   : > { %p360_p3 = por %p359_p4, %p358_p2 }
  0x60   : > { %p356_p0 = pneg %p355_p11 }
  0x61   : > { %p362_p12 = por %p361_p8, %p360_p3 }
  0x63   : > { %p363_p13 = pnand %p362_p12, %p356_p0 }
  0x65   : > { %366 = shalt.err (!%p363_p13)
}
  0x66   : > { %252 = dma.vmem_to_hbm [thread:$0]  (%p597_p9), %s541_s23, 128, %s538_s8, %s157_s9  }
  0x67 PF: > { %p264_p1 = scmp.ge.s32.totalorder %s407_s22, 2  ;;  %s182_s30 = sand.u32 1, %s395_s19  }
  0x68   : > { %p598_p5 = scmp.ne.s32.totalorder %s591_s29, 0  ;;  %s183_s26 = scalar_lea.sflag [#allocation6], %s182_s30 }
  0x6a   : > { %p259_p6 = pnand %p264_p1, %p598_p5 }
  0x6c   : > { %390 = dma.done.wait (!%p259_p6), %s183_s26, 128  }
  0x6d   : > { %392 = vsyncadd (!%p259_p6), %s183_s26, 4294967168  ;;  %p17_p7 = scmp.ge.s32.totalorder %s466_s24, 4   ;;  %s599_s19 = smov %s399_s20 }
  0x6e   : > { %s600_s20 = smov %s403_s21  ;;  %s601_s21 = smov %s477_s27 }
  0x6f   : > { %s602_s22 = smov %s466_s24  ;;  %19 = sbr.rel (!%p17_p7) target bundleno = 16 (0x10), region = 69 }
  0x76   :  { %188 = vsyncpa [#allocation5], 1 }
  0x77   :  { %190 = vsyncpa [#allocation5 + $0x1], 1 }
  0x78   :  { %191 = vsyncpa [#allocation6], 1 }
  0x79   :  { %193 = vsyncpa [#allocation6 + $0x1], 1 }

</bundles_post_ra>
